<compile_context>
chip_gen: v7x
topology: tpu7x:2x2x1
jax: 0.10.0
libtpu: 0.0.40
codegen_flags: <defaults>
</compile_context>

<pallas_src>
import math

import jax
import jax.numpy as jnp
from jax import lax
from jax.experimental import pallas as pl
from jax.experimental.pallas import tpu as pltpu

_EPS = 1e-5  # PyTorch GroupNorm default eps


def _vmem_limit_bytes(default=64 * 1024 * 1024):
    """~75% of physical VMEM (96 MiB on v5e/v6e, 48 MiB on v7x); safe fallback."""
    try:
        info = pltpu.get_tpu_info()
        cap = getattr(info, "vmem_capacity_bytes", None)
        if cap:
            return int(cap * 0.75)
    except Exception:
        pass
    return default


# ---------------------------------------------------------------------------
# Kernel 1: ConvTranspose2d(kernel=2, stride=2) as an M-tiled matmul.
# With stride == kernel == 2 there is no overlap:
#   out[n, 2i+kh, 2j+kw, co] = bias[co] + sum_ci x[n, i, j, ci] * W[ci, co, kh, kw]
# i.e. x2d(M, Cin) @ W2d(Cin, 4*Cout) + bias; interleaved afterwards in the wrapper.
# ---------------------------------------------------------------------------
def _upconv_matmul_kernel(x_ref, w_ref, b_ref, o_ref):
    acc = jnp.dot(x_ref[...], w_ref[...], preferred_element_type=jnp.float32)
    o_ref[...] = (acc + b_ref[...]).astype(o_ref.dtype)


def conv_transpose2x2(x_nhwc, wt, bt, tm=1024):
    """x_nhwc: (N, H, W, Cin); wt: (Cin, Cout, 2, 2) (PyTorch layout); bt: (Cout,)."""
    N, H, W, Cin = x_nhwc.shape
    Cout = wt.shape[1]
    # columns ordered [kh, kw, co]
    w2d = jnp.transpose(wt, (0, 2, 3, 1)).reshape(Cin, 4 * Cout).astype(jnp.bfloat16)
    b2d = jnp.tile(bt, 4).reshape(1, 4 * Cout).astype(jnp.float32)
    x2d = x_nhwc.reshape(N * H * W, Cin).astype(jnp.bfloat16)
    M = N * H * W
    tm = min(tm, M)

    y = pl.pallas_call(
        _upconv_matmul_kernel,
        out_shape=jax.ShapeDtypeStruct((M, 4 * Cout), jnp.bfloat16),
        grid=(pl.cdiv(M, tm),),
        in_specs=[
            pl.BlockSpec((tm, Cin), lambda i: (i, 0)),
            pl.BlockSpec((Cin, 4 * Cout), lambda i: (0, 0)),
            pl.BlockSpec((1, 4 * Cout), lambda i: (0, 0)),
        ],
        out_specs=pl.BlockSpec((tm, 4 * Cout), lambda i: (i, 0)),
        compiler_params=pltpu.CompilerParams(
            dimension_semantics=("parallel",),
            vmem_limit_bytes=_vmem_limit_bytes(),
        ),
    )(x2d, w2d, b2d)

    y = y.reshape(N, H, W, 2, 2, Cout)                      # (N, H, W, kh, kw, Cout)
    # TODO(synk): emit this interleave + the downstream pad directly from the kernel's
    #             out_spec / a per-row grid to drop the remaining XLA passes over `up`.
    y = jnp.transpose(y, (0, 1, 3, 2, 4, 5)).reshape(N, 2 * H, 2 * W, Cout)
    return y


# ---------------------------------------------------------------------------
# Kernel 2: fused DoubleConv.
#   conv1(3x3, skip||up) -> GN(32) -> ReLU  (kept in VMEM, laid out as conv2's padded
#   input) -> conv2(3x3) -> GN(32) -> ReLU -> output (wide layout, junk cols stripped
#   by the wrapper).
#
# Inputs are row-flattened padded images ((H+3)*(W+2), C) so that every 3x3 tap is a
# contiguous pl.ds slice of length H*(W+2) at static offset dy*(W+2)+dx.  The conv is
# computed on the padded width (W+2); the 2 junk columns per row are masked out of the
# GroupNorm statistics and zeroed in the mid buffer (they become conv2's padding).
# ---------------------------------------------------------------------------
def _make_double_conv_kernel(H, W, mid_ch, out_ch, cpg1, cpg2):
    Wp = W + 2
    Hw = H * Wp
    inv_n1 = 1.0 / float(cpg1 * H * W)
    inv_n2 = 1.0 / float(cpg2 * H * W)

    def gn_relu(acc, gmat, gamma, beta, inv_n, maskb):
        # Two-pass GroupNorm (mean, then centered SSD) over valid pixels only.
        acc_m = jnp.where(maskb, acc, 0.0)
        mean = jnp.dot(jnp.sum(acc_m, axis=0, keepdims=True), gmat,
                       preferred_element_type=jnp.float32) * inv_n
        cen = acc - mean                                       # reused for var + output
        cen_m = jnp.where(maskb, cen, 0.0)
        var = jnp.dot(jnp.sum(cen_m * cen_m, axis=0, keepdims=True), gmat,
                      preferred_element_type=jnp.float32) * inv_n
        scale = lax.rsqrt(var + _EPS) * gamma                  # per-channel (1, C)
        return jnp.maximum(cen * scale + beta, 0.0)

    def kernel(skip_ref, up_ref, w1_ref, w2_ref,
               g1_ref, b1_ref, gm1_ref, g2_ref, b2_ref, gm2_ref,
               o_ref, cat_ref, mid_ref):
        # ---- fused concat (never materialized in HBM): one full-width VMEM store ----
        cat_ref[...] = jnp.concatenate([skip_ref[...], up_ref[...]], axis=-1)

        # valid-pixel mask of the "wide" (W+2 column) layout
        col = lax.broadcasted_iota(jnp.int32, (Hw, 1), 0) % Wp
        maskb = col < W                                        # (Hw, 1) bool

        # ---- conv1: 9 contiguous taps, K = skip_ch + up_ch, local f32 accumulator ----
        acc1 = jnp.zeros((Hw, mid_ch), jnp.float32)
        for t in range(9):
            dy, dx = divmod(t, 3)
            patch = cat_ref[pl.ds(dy * Wp + dx, Hw), :]        # (Hw, cat_ch) bf16
            acc1 = acc1 + jnp.dot(patch, w1_ref[t],
                                  preferred_element_type=jnp.float32)

        y1 = gn_relu(acc1, gm1_ref[...], g1_ref[...], b1_ref[...], inv_n1, maskb)
        # Junk columns become conv2's left/right padding -> must be exactly zero.
        y1 = jnp.where(maskb, y1, 0.0)                         # (Hw, mid_ch) f32

        # mid_ref is the padded row-flattened input of conv2: zero borders + valid slab.
        mid_ref[pl.ds(0, Wp + 1), :] = jnp.zeros((Wp + 1, mid_ch), jnp.float32)
        mid_ref[pl.ds(Wp + 1, Hw), :] = y1
        mid_ref[pl.ds(Wp + 1 + Hw, 2 * Wp - 1), :] = jnp.zeros((2 * Wp - 1, mid_ch),
                                                               jnp.float32)

        # ---- conv2: 9 contiguous taps over the in-VMEM mid activation ----
        acc2 = jnp.zeros((Hw, out_ch), jnp.float32)
        for t in range(9):
            dy, dx = divmod(t, 3)
            patch = mid_ref[pl.ds(dy * Wp + dx, Hw), :].astype(jnp.bfloat16)
            acc2 = acc2 + jnp.dot(patch, w2_ref[t],
                                  preferred_element_type=jnp.float32)

        y2 = gn_relu(acc2, gm2_ref[...], g2_ref[...], b2_ref[...], inv_n2, maskb)
        # Junk output columns are stripped by the wrapper -> unmasked lane-dense store.
        o_ref[...] = y2.astype(o_ref.dtype)

    return kernel


def double_conv_fused(skip_flat, up_flat, w1, w2, g1, b1, gm1, g2, b2, gm2,
                      cpg1, cpg2, H, W, out_dtype=jnp.float32):
    """skip_flat/up_flat: (N, (H+3)*(W+2), C) bf16 row-flattened padded images.
    w1: (9, skip_ch+up_ch, mid_ch) bf16; w2: (9, mid_ch, out_ch) bf16.
    Returns the "wide" output (N, H*(W+2), out_ch)."""
    N, Lp, skip_ch = skip_flat.shape
    up_ch = up_flat.shape[-1]
    cat_ch = skip_ch + up_ch
    mid_ch = w1.shape[-1]
    out_ch = w2.shape[-1]
    Hw = H * (W + 2)

    kernel = _make_double_conv_kernel(H, W, mid_ch, out_ch, cpg1, cpg2)

    in_specs = [
        pl.BlockSpec((None, Lp, skip_ch), lambda n: (n, 0, 0)),
        pl.BlockSpec((None, Lp, up_ch), lambda n: (n, 0, 0)),
        pl.BlockSpec((9, cat_ch, mid_ch), lambda n: (0, 0, 0)),
        pl.BlockSpec((9, mid_ch, out_ch), lambda n: (0, 0, 0)),
        pl.BlockSpec((1, mid_ch), lambda n: (0, 0)),
        pl.BlockSpec((1, mid_ch), lambda n: (0, 0)),
        pl.BlockSpec((mid_ch, mid_ch), lambda n: (0, 0)),
        pl.BlockSpec((1, out_ch), lambda n: (0, 0)),
        pl.BlockSpec((1, out_ch), lambda n: (0, 0)),
        pl.BlockSpec((out_ch, out_ch), lambda n: (0, 0)),
    ]
    operands = [
        skip_flat, up_flat, w1, w2,
        g1.reshape(1, mid_ch).astype(jnp.float32),
        b1.reshape(1, mid_ch).astype(jnp.float32),
        gm1.astype(jnp.float32),
        g2.reshape(1, out_ch).astype(jnp.float32),
        b2.reshape(1, out_ch).astype(jnp.float32),
        gm2.astype(jnp.float32),
    ]

    # TODO(synk): add a second "parallel" grid axis (spatial row tiles) so both v7x
    #             TensorCores get work when N == 1, once the tiled two-pass GN lands.
    return pl.pallas_call(
        kernel,
        out_shape=jax.ShapeDtypeStruct((N, Hw, out_ch), out_dtype),
        grid=(N,),
        in_specs=in_specs,
        out_specs=pl.BlockSpec((None, Hw, out_ch), lambda n: (n, 0, 0)),
        scratch_shapes=[
            pltpu.VMEM((Lp, cat_ch), jnp.bfloat16),   # concatenated padded input
            pltpu.VMEM((Lp, mid_ch), jnp.float32),    # padded mid activation (f32)
        ],
        compiler_params=pltpu.CompilerParams(
            dimension_semantics=("parallel",),
            vmem_limit_bytes=_vmem_limit_bytes(),
        ),
    )(*operands)


def _pad_flatten(x_nhwc):
    """NHWC -> row-flattened padded (N, (H+3)*(W+2), C): pad rows (1,2), cols (1,1)."""
    N, H, W, C = x_nhwc.shape
    xp = jnp.pad(x_nhwc, ((0, 0), (1, 2), (1, 1), (0, 0)))
    return xp.reshape(N, (H + 3) * (W + 2), C)


# ---------------------------------------------------------------------------
# Up.forward
# ---------------------------------------------------------------------------
def up_forward(x_low_nchw, x_skip_nchw, p):
    x_low = jnp.transpose(x_low_nchw, (0, 2, 3, 1))            # NCHW -> NHWC
    x_skip = jnp.transpose(x_skip_nchw, (0, 2, 3, 1)).astype(jnp.bfloat16)

    up = conv_transpose2x2(x_low, p["wt"], p["bt"])            # (N, 2H, 2W, out_ch) bf16
    N, H, W, up_ch = up.shape
    skip_ch = x_skip.shape[-1]
    cat_ch = skip_ch + up_ch
    mid_ch = p["w1"].shape[-1]
    out_ch = p["w2"].shape[-1]

    # HWIO weights, input channels ordered [skip, up] (matches torch.cat([x_skip, up]))
    w1 = p["w1"].reshape(9, cat_ch, mid_ch).astype(jnp.bfloat16)
    w2 = p["w2"].reshape(9, mid_ch, out_ch).astype(jnp.bfloat16)

    skip_flat = _pad_flatten(x_skip)
    up_flat = _pad_flatten(up)

    out_wide = double_conv_fused(
        skip_flat, up_flat, w1, w2,
        p["g1"], p["b1"], p["gmat1"],
        p["g2"], p["b2"], p["gmat2"],
        p["cpg1"], p["cpg2"], H, W, out_dtype=jnp.float32)

    out = out_wide.reshape(N, H, W + 2, out_ch)[:, :, :W, :]   # strip junk columns
    return jnp.transpose(out, (0, 3, 1, 2))                    # back to NCHW


# ---------------------------------------------------------------------------
# Pure-JAX reference (independent path via lax.conv) for correctness checking.
# ---------------------------------------------------------------------------
def _ref_forward(x_low_nchw, x_skip_nchw, p):
    hp = jax.lax.Precision.HIGHEST
    xl = jnp.transpose(x_low_nchw, (0, 2, 3, 1))
    xs = jnp.transpose(x_skip_nchw, (0, 2, 3, 1))
    N, H, W, _ = xl.shape
    Cout = p["wt"].shape[1]

    y = jnp.einsum("nhwi,iodk->nhwdko", xl, p["wt"], precision=hp) + p["bt"]
    up = jnp.transpose(y, (0, 1, 3, 2, 4, 5)).reshape(N, 2 * H, 2 * W, Cout)
    x = jnp.concatenate([xs, up], axis=-1)

    def block(x, w, g, b, groups):
        z = lax.conv_general_dilated(x, w, (1, 1), "SAME",
                                     dimension_numbers=("NHWC", "HWIO", "NHWC"),
                                     precision=hp)
        n, h, w_, c = z.shape
        zg = z.reshape(n, h, w_, groups, c // groups)
        mean = zg.mean(axis=(1, 2, 4), keepdims=True)
        var = zg.var(axis=(1, 2, 4), keepdims=True)
        zg = (zg - mean) / jnp.sqrt(var + _EPS)
        z = zg.reshape(n, h, w_, c) * g + b
        return jnp.maximum(z, 0.0)

    mid = block(x, p["w1"], p["g1"], p["b1"], 32)
    out = block(mid, p["w2"], p["g2"], p["b2"], 32)
    return jnp.transpose(out, (0, 3, 1, 2))


def _group_matrix(C, G):
    cpg = C // G
    gid = jnp.arange(C) // cpg
    return (gid[:, None] == gid[None, :]).astype(jnp.float32)


if __name__ == "__main__":
    key = jax.random.PRNGKey(0)
    ks = jax.random.split(key, 10)

    N = 2
    in_ch, skip_ch, out_ch = 64, 32, 32      # GroupNorm(32, C) requires C % 32 == 0
    Hl = Wl = 8                              # x_low spatial; x_skip is 2x
    cat_ch = skip_ch + out_ch                # concat channels = 64
    mid_ch = out_ch

    params = dict(
        # ConvTranspose2d(in_ch, out_ch, 2, 2): weight (Cin, Cout, 2, 2), bias (Cout,)
        wt=jax.random.normal(ks[0], (in_ch, out_ch, 2, 2), jnp.float32)
           * (1.0 / math.sqrt(in_ch * 4)),
        bt=jax.random.normal(ks[1], (out_ch,), jnp.float32) * 0.05,
        # DoubleConv weights, stored HWIO (PyTorch stores OIHW; same parameter count)
        w1=jax.random.normal(ks[2], (3, 3, cat_ch, mid_ch), jnp.float32)
           * (1.0 / math.sqrt(9 * cat_ch)),
        g1=1.0 + 0.2 * jax.random.normal(ks[6], (mid_ch,), jnp.float32),
        b1=0.1 * jax.random.normal(ks[7], (mid_ch,), jnp.float32),
        w2=jax.random.normal(ks[3], (3, 3, mid_ch, out_ch), jnp.float32)
           * (1.0 / math.sqrt(9 * mid_ch)),
        g2=1.0 + 0.2 * jax.random.normal(ks[8], (out_ch,), jnp.float32),
        b2=0.1 * jax.random.normal(ks[9], (out_ch,), jnp.float32),
        gmat1=_group_matrix(mid_ch, 32),
        cpg1=mid_ch // 32,
        gmat2=_group_matrix(out_ch, 32),
        cpg2=out_ch // 32,
    )

    x_low = jax.random.normal(ks[4], (N, in_ch, Hl, Wl), jnp.float32)
    x_skip = jax.random.normal(ks[5], (N, skip_ch, 2 * Hl, 2 * Wl), jnp.float32)

    out = up_forward(x_low, x_skip, params)
    out = jax.block_until_ready(out)

    ref = _ref_forward(x_low, x_skip, params)
    assert out.shape == (N, out_ch, 2 * Hl, 2 * Wl), out.shape
    # bf16 MXU operands (f32 accumulation) -> loose tolerance vs the f32 reference.
    assert jnp.allclose(out, ref, rtol=5e-2, atol=5e-2), \
        float(jnp.max(jnp.abs(out - ref)))

    print("KERNEL_OK")
</pallas_src>

<mosaic_0001>
module attributes {stable_mosaic.version = 11 : i64} {
  func.func @_upconv_matmul_kernel(%arg0: i32, %arg1: memref<128x64xbf16, #tpu.memory_space<vmem>>, %arg2: memref<64x128xbf16, #tpu.memory_space<vmem>>, %arg3: memref<1x128xf32, #tpu.memory_space<vmem>>, %arg4: memref<128x128xbf16, #tpu.memory_space<vmem>>) attributes {dimension_semantics = [#tpu.dimension_semantics<parallel>], iteration_bounds = array<i64: 1>, scalar_prefetch = 0 : i64, scratch_operands = 0 : i64, tpu.core_type = #tpu.core_type<tc>, window_params = [{transform_indices = @transform_0, window_bounds = array<i64: 128, 64>}, {pipeline_mode = #tpu.pipeline_mode<synchronous>, transform_indices = @transform_1, window_bounds = array<i64: 64, 128>}, {pipeline_mode = #tpu.pipeline_mode<synchronous>, transform_indices = @transform_2, window_bounds = array<i64: 1, 128>}, {transform_indices = @transform_3, window_bounds = array<i64: 128, 128>}]} {
    %c0 = arith.constant 0 : index
    %c0_0 = arith.constant 0 : index
    %0 = vector.load %arg1[%c0, %c0_0] : memref<128x64xbf16, #tpu.memory_space<vmem>>, vector<128x64xbf16>
    %c0_1 = arith.constant 0 : index
    %c0_2 = arith.constant 0 : index
    %1 = vector.load %arg2[%c0_1, %c0_2] : memref<64x128xbf16, #tpu.memory_space<vmem>>, vector<64x128xbf16>
    %cst = arith.constant dense<0.000000e+00> : vector<128x128xf32>
    %2 = tpu.matmul %0, %1, %cst {dimension_numbers = #tpu.dot_dimension_numbers<[1], [0], [0], [1], [0, 0, 1, 1], [], []>} : vector<128x64xbf16>, vector<64x128xbf16>, vector<128x128xf32> -> vector<128x128xf32>
    %c0_3 = arith.constant 0 : index
    %c0_4 = arith.constant 0 : index
    %3 = vector.load %arg3[%c0_3, %c0_4] : memref<1x128xf32, #tpu.memory_space<vmem>>, vector<1x128xf32>
    %4 = vector.broadcast %3 : vector<1x128xf32> to vector<128x128xf32>
    %5 = arith.addf %2, %4 : vector<128x128xf32>
    %6 = arith.truncf %5 : vector<128x128xf32> to vector<128x128xbf16>
    %c0_5 = arith.constant 0 : index
    %c0_6 = arith.constant 0 : index
    %7 = vector.load %arg4[%c0_5, %c0_6] : memref<128x128xbf16, #tpu.memory_space<vmem>>, vector<128x128xbf16>
    tpu.vector_store %arg4[%c0_5, %c0_6], %6 {strides = array<i32>} : memref<128x128xbf16, #tpu.memory_space<vmem>>, vector<128x128xbf16>,
    return
  }
  func.func @transform_0(%arg0: i32) -> (i32, i32) {
    %c0_i32 = arith.constant 0 : i32
    %c0_i32_0 = arith.constant 0 : i32
    return %arg0, %c0_i32 : i32, i32
  }
  func.func @transform_1(%arg0: i32) -> (i32, i32) {
    %c0_i32 = arith.constant 0 : i32
    %c0_i32_0 = arith.constant 0 : i32
    %c0_i32_1 = arith.constant 0 : i32
    return %c0_i32, %c0_i32_0 : i32, i32
  }
  func.func @transform_2(%arg0: i32) -> (i32, i32) {
    %c0_i32 = arith.constant 0 : i32
    %c0_i32_0 = arith.constant 0 : i32
    %c0_i32_1 = arith.constant 0 : i32
    return %c0_i32, %c0_i32_0 : i32, i32
  }
  func.func @transform_3(%arg0: i32) -> (i32, i32) {
    %c0_i32 = arith.constant 0 : i32
    %c0_i32_0 = arith.constant 0 : i32
    return %arg0, %c0_i32 : i32, i32
  }
}

</mosaic_0001>

<bundles_post_ra>
// kernel: tpu_custom_call.1
= control target key start
LH: loop header
LB: loop body
LE: loop exit
PB: predicated region body
PF: predicated region fallthrough
CT: control target
= control target key end

     0   :  { %8 = vsyncpa [#allocation3], 0  ;;  %s724_s0 = inlined_call_operand.hbm [shape: bf16[128,64], index: 0, kind: input, shape index: {}]   ;;  %s725_s1 = inlined_call_operand.hbm [shape: bf16[64,128], index: 1, kind: input, shape index: {}]   ;;  %s726_s2 = inlined_call_operand.hbm [shape: f32[1,128], index: 2, kind: input, shape index: {}]   ;;  %s727_s3 = inlined_call_operand.hbm [shape: bf16[128,128], index: 3, kind: output, shape index: {}]  }
   0x1   :  { %9 = vsyncpa [#allocation6], 0 }
   0x2   :  { %10 = vsyncpa [#allocation4], 0  ;;  %s626_s12 = smov [#allocation5]   ;;  %s627_s14 = smov [#allocation2]  }
   0x3   :  { %s28_s13 = sshll.u32 %s626_s12, 4  ;;  %s16_s15 = sshll.u32 %s627_s14, 4  ;;  %s29_s13 = int_to_ptr.vmem [resolvable:$true] %s28_s13  ;;  %s652_s15 = int_to_ptr.vmem [resolvable:$true] %s16_s15 }
   0x4   :  { %s532_s18 = scalar_lea.hbm %s725_s1, 512 }
   0x5   :  { %p533_p0 = scmp.ne.s32.totalorder %s725_s1, %s532_s18  ;;  %p536_p1 = scmp.lt.u32.totalorder %s532_s18, %s725_s1 }
   0x7   :  { %p538_p2 = pnand %p536_p1, %p533_p0 }
   0x9   :  { %541 = shalt.err (!%p538_p2)
}
   0xa   :  { %s542_s23 = scalar_lea.vmem %s29_s13, 512  ;;  %p547_p4 = scmp.lt.s32.totalorder %s29_s13, %s29_s13 }
   0xb   :  { %p543_p3 = scmp.ne.s32.totalorder %s29_s13, %s542_s23  ;;  %p548_p5 = scmp.lt.s32.totalorder %s542_s23, %s542_s23 }
   0xd   :  { %p549_p6 = por %p548_p5, %p547_p4 }
   0xf   :  { %p550_p7 = pnand %p549_p6, %p543_p3 }
  0x11   :  { %553 = shalt.err (!%p550_p7)
}
  0x12   :  { %s628_s24 = smov 64   ;;  %s629_s25 = smov 4  }
  0x13   :  { %34 = dma.hbm_to_vmem [thread:$0]  %s725_s1, 512, %s29_s13, [#allocation6], %s628_s24, %s628_s24, %s629_s25  }
  0x14   :  { %s554_s30 = scalar_lea.hbm %s724_s0, 1024 }
  0x15   :  { %p555_p8 = scmp.ne.s32.totalorder %s724_s0, %s554_s30  ;;  %p558_p9 = scmp.lt.u32.totalorder %s554_s30, %s724_s0 }
  0x17   :  { %p560_p10 = pnand %p558_p9, %p555_p8 }
  0x19   :  { %563 = shalt.err (!%p560_p10)
}
  0x1a   :  { %s564_s8 = scalar_lea.vmem %s652_s15, 1024  ;;  %p569_p12 = scmp.lt.s32.totalorder %s652_s15, %s652_s15 }
  0x1b   :  { %p565_p11 = scmp.ne.s32.totalorder %s652_s15, %s564_s8  ;;  %p570_p13 = scmp.lt.s32.totalorder %s564_s8, %s564_s8 }
  0x1d   :  { %p571_p0 = por %p570_p13, %p569_p12 }
  0x1f   :  { %p572_p1 = pnand %p571_p0, %p565_p11 }
  0x21   :  { %575 = shalt.err (!%p572_p1)
}
  0x22   :  { %22 = dma.hbm_to_vmem [thread:$0]  %s724_s0, 1024, %s652_s15, [#allocation3], %s628_s24, %s628_s24, %s629_s25  }
  0x23   :  { %s630_s10 = smov [#allocation7]   ;;  %s576_s14 = scalar_lea.hbm %s726_s2, 16 }
  0x24   :  { %s41_s11 = sshll.u32 %s630_s10, 4  ;;  %p577_p2 = scmp.ne.s32.totalorder %s726_s2, %s576_s14  ;;  %s42_s11 = int_to_ptr.vmem [resolvable:$true] %s41_s11 }
  0x25   :  { %p580_p3 = scmp.lt.u32.totalorder %s576_s14, %s726_s2 }
  0x27   :  { %p582_p4 = pnand %p580_p3, %p577_p2 }
  0x29   :  { %585 = shalt.err (!%p582_p4)
}
  0x2a   :  { %s586_s20 = scalar_lea.vmem %s42_s11, 16  ;;  %s590_s0 = scalar_lea.vmem %s42_s11, 32 }
  0x2b   :  { %p587_p5 = scmp.ne.s32.totalorder %s42_s11, %s586_s20  ;;  %p591_p6 = scmp.lt.s32.totalorder %s42_s11, %s42_s11 }
  0x2c   :  { %p592_p7 = scmp.lt.s32.totalorder %s590_s0, %s586_s20 }
  0x2e   :  { %p593_p8 = por %p592_p7, %p591_p6 }
  0x30   :  { %p594_p9 = pnand %p593_p8, %p587_p5 }
  0x32   :  { %597 = shalt.err (!%p594_p9)
}
  0x33   :  { %44 = dma.hbm_to_vmem [thread:$0]  %s726_s2, 16, %s42_s11, [#allocation6]  }
  0x34   :  { %620 = dma.done.wait [#allocation3], 1024  }
  0x35   :  { %621 = vsyncadd [#allocation3], 4294966272 }
  0x36   :  { %622 = dma.done.wait [#allocation6], 528  }
  0x37   :  { %623 = vsyncadd [#allocation6], 4294966768  ;;  %v520_v0 = vld [vmem:[#allocation5] sm:$0xff]   ;;  %v521_v1 = vld [vmem:[#allocation5 + $0x8] sm:$0xff]   ;;  %vm150_vm0 = vcmask 523264   ;;  %s631_s2 = smov [#allocation8]  }
  0x38   :  { %482 = vmatprep.subr.bf16.mxu0 %v520_v0  ;;  %506 = vmatprep.subr.bf16.mxu1 %v520_v0  ;;  %v522_v2 = vld [vmem:[#allocation5 + $0x10] sm:$0xff]   ;;  %v524_v3 = vld [vmem:[#allocation2] sm:$0xff]   ;;  %v523_v5 = vld [vmem:[#allocation5 + $0x18] sm:$0xff]   ;;  %s357_s22 = sshll.u32 %s631_s2, 4  ;;  %s358_s22 = int_to_ptr.vmem [resolvable:$true] %s357_s22 }
  0x39   :  { %483 = vmatpush3.bf16.msra.mxu0 %v520_v0  ;;  %510 = vmatpush3.bf16.msra.mxu1 %v520_v0  ;;  %v525_v4 = vld [vmem:[#allocation2 + $0x20] sm:$0xff]   ;;  %v526_v6 = vld [vmem:[#allocation2 + $0x8] sm:$0xff]   ;;  %v528_v8 = vld [vmem:[#allocation2 + $0x10] sm:$0xff]   ;;  %s598_s23 = scalar_lea.vmem %s358_s22, 1024  ;;  %p603_p11 = scmp.lt.s32.totalorder %s358_s22, %s358_s22 }
  0x3a   :  { %484 = vmatprep.subr.bf16.mxu0 %v521_v1  ;;  %507 = vmatprep.subr.bf16.mxu1 %v521_v1  ;;  %v527_v7 = vld [vmem:[#allocation2 + $0x28] sm:$0xff]   ;;  %v529_v9 = vld [vmem:[#allocation2 + $0x30] sm:$0xff]   ;;  %v530_v10 = vld [vmem:[#allocation2 + $0x18] sm:$0xff]   ;;  %p599_p10 = scmp.ne.s32.totalorder %s358_s22, %s598_s23  ;;  %p604_p12 = scmp.lt.s32.totalorder %s598_s23, %s598_s23 }
  0x3b   :  { %490 = vmatprep.mubr.msk.bf16.mxu0 %vm150_vm0, %v524_v3  ;;  %498 = vmatprep.mubr.msk.bf16.mxu1 %vm150_vm0, %v525_v4  ;;  %v531_v11 = vld [vmem:[#allocation2 + $0x38] sm:$0xff]   ;;  %v370_v13 = vld [vmem:[#allocation7] ss:$0 sm:$0xff] }
  0x3c   :  { %p605_p13 = por %p604_p12, %p603_p11 }
  0x3d   :  { %485 = vmatpush3.bf16.msra.mxu0 %v521_v1  ;;  %511 = vmatpush3.bf16.msra.mxu1 %v521_v1 }
  0x3e   :  { %486 = vmatprep.subr.bf16.mxu0 %v522_v2  ;;  %508 = vmatprep.subr.bf16.mxu1 %v522_v2  ;;  %p606_p0 = pnand %p605_p13, %p599_p10 }
  0x41   :  { %487 = vmatpush3.bf16.msra.mxu0 %v522_v2  ;;  %512 = vmatpush3.bf16.msra.mxu1 %v522_v2 }
  0x42   :  { %488 = vmatprep.subr.bf16.mxu0 %v523_v5  ;;  %509 = vmatprep.subr.bf16.mxu1 %v523_v5 }
  0x45   :  { %489 = vmatpush3.bf16.msra.mxu0 %v523_v5  ;;  %513 = vmatpush3.bf16.msra.mxu1 %v523_v5 }
  0x48   :  { %491 = vmatmul.mubr.msk.bf16.vlgmr.msra.gmra.mrb[0].mxu0 %vm150_vm0, %v526_v6  ;;  %499 = vmatmul.mubr.msk.bf16.vlgmr.msra.gmra.mrb[0].mxu1 %vm150_vm0, %v527_v7 }
  0x49   :  { %494 = vmatprep.mubr.msk.bf16.mxu0 %vm150_vm0, %v528_v8  ;;  %502 = vmatprep.mubr.msk.bf16.mxu1 %vm150_vm0, %v529_v9 }
  0x50   :  { %495 = vmatmul.mubr.msk.bf16.gmra.mrb[4].mxu0 %vm150_vm0, %v530_v10  ;;  %503 = vmatmul.mubr.msk.bf16.gmra.mrb[4].mxu1 %vm150_vm0, %v531_v11 }
 0x11b   :  { %v492_v12 = vpop.f32.mrb[0].mxu0  ;;  %v500_v14 = vpop.f32.mrb[0].mxu1 }
 0x11c   :  { %v209_v15 = vpop.f32.mrb[1].mxu0  ;;  %v241_v16 = vpop.f32.mrb[1].mxu1  ;;  %v218_v19 = vadd.f32 %v492_v12, %v370_v13  ;;  %v250_v20 = vadd.f32 %v500_v14, %v370_v13 }
 0x11d   :  { %v493_v17 = vpop.f32.mrb[2].mxu0  ;;  %v501_v18 = vpop.f32.mrb[2].mxu1  ;;  %v210_v25 = vadd.f32 %v370_v13, %v209_v15  ;;  %v242_v26 = vadd.f32 %v370_v13, %v241_v16 }
 0x11e   :  { %v221_v21 = vadd.f32 %v493_v17, %v370_v13  ;;  %v253_v22 = vadd.f32 %v501_v18, %v370_v13  ;;  %v212_v23 = vpop.f32.mrb[3].mxu0  ;;  %v244_v24 = vpop.f32.mrb[3].mxu1 }
 0x11f   :  { %v213_v27 = vadd.f32 %v370_v13, %v212_v23  ;;  %v245_v28 = vadd.f32 %v370_v13, %v244_v24 }
 0x120   :  { %v431_v29 = vpack.c.bf16 %v221_v21, %v218_v19  ;;  %v451_v30 = vpack.c.bf16 %v253_v22, %v250_v20 }
 0x121   :  { %v426_v31 = vpack.c.bf16 %v213_v27, %v210_v25  ;;  %v446_v32 = vpack.c.bf16 %v245_v28, %v242_v26 }
 0x122   :  { %463 = vst [vmem:[#allocation8 + $0x8] sm:$0xff] %v431_v29   ;;  %467 = vst [vmem:[#allocation8 + $0x28] sm:$0xff] %v451_v30  }
 0x123   :  { %427 = vst [vmem:[#allocation8] sm:$0xff] %v426_v31   ;;  %466 = vst [vmem:[#allocation8 + $0x20] sm:$0xff] %v446_v32   ;;  %v496_v33 = vpop.f32.mrb[4].mxu0  ;;  %v504_v34 = vpop.f32.mrb[4].mxu1 }
 0x124   :  { %v225_v35 = vpop.f32.mrb[5].mxu0  ;;  %v257_v36 = vpop.f32.mrb[5].mxu1  ;;  %v234_v39 = vadd.f32 %v496_v33, %v370_v13  ;;  %v266_v40 = vadd.f32 %v504_v34, %v370_v13 }
 0x125   :  { %v497_v37 = vpop.f32.mrb[6].mxu0  ;;  %v505_v38 = vpop.f32.mrb[6].mxu1  ;;  %v226_v45 = vadd.f32 %v370_v13, %v225_v35  ;;  %v258_v46 = vadd.f32 %v370_v13, %v257_v36 }
 0x126   :  { %v237_v41 = vadd.f32 %v497_v37, %v370_v13  ;;  %v269_v42 = vadd.f32 %v505_v38, %v370_v13  ;;  %v228_v43 = vpop.f32.mrb[7].mxu0  ;;  %v260_v44 = vpop.f32.mrb[7].mxu1 }
 0x127   :  { %v229_v47 = vadd.f32 %v370_v13, %v228_v43  ;;  %v261_v48 = vadd.f32 %v370_v13, %v260_v44 }
 0x128   :  { %v441_v49 = vpack.c.bf16 %v237_v41, %v234_v39  ;;  %v461_v50 = vpack.c.bf16 %v269_v42, %v266_v40 }
 0x129   :  { %v436_v51 = vpack.c.bf16 %v229_v47, %v226_v45  ;;  %v456_v52 = vpack.c.bf16 %v261_v48, %v258_v46 }
 0x12a   :  { %465 = vst [vmem:[#allocation8 + $0x18] sm:$0xff] %v441_v49   ;;  %469 = vst [vmem:[#allocation8 + $0x38] sm:$0xff] %v461_v50  }
 0x12b   :  { %464 = vst [vmem:[#allocation8 + $0x10] sm:$0xff] %v436_v51   ;;  %468 = vst [vmem:[#allocation8 + $0x30] sm:$0xff] %v456_v52  }
 0x12c   :  { %609 = shalt.err (!%p606_p0)
}
 0x12d   :  { %s610_s28 = scalar_lea.hbm %s727_s3, 1024 }
 0x12e   :  { %p611_p1 = scmp.ne.s32.totalorder %s727_s3, %s610_s28  ;;  %p614_p2 = scmp.lt.u32.totalorder %s610_s28, %s727_s3 }
 0x130   :  { %p616_p3 = pnand %p614_p2, %p611_p1 }
 0x132   :  { %619 = shalt.err (!%p616_p3)
}
 0x133   :  { %363 = dma.vmem_to_hbm [thread:$0]  %s358_s22, 1024, %s727_s3, [#allocation4], %s628_s24, %s628_s24, %s629_s25  }
 0x134   :  { %624 = dma.done.wait [#allocation4], 1024  }
 0x135   :  { %625 = vsyncadd [#allocation4], 4294966272 }
 0x136   :  { %367 = vsyncpa [#allocation3], 1 }
 0x137   :  { %368 = vsyncpa [#allocation6], 1 }
 0x138   :  { %369 = vsyncpa [#allocation4], 1 }

</bundles_post_ra>
